<compile_context>
chip_gen: v5e
topology: v5e:2x2
jax: 0.10.0
libtpu: 0.0.40
codegen_flags: <defaults>
</compile_context>

<pallas_src>
import jax
import jax.numpy as jnp
from jax.experimental import pallas as pl
from jax.experimental.pallas import tpu as pltpu

_VMEM_BUDGET_BYTES = 24 << 20      # working-set budget (safe across v5e/v6e/v7x)
_VMEM_LIMIT_BYTES = 48 << 20       # scoped VMEM limit (< 64 MiB physical on v7x)
_WEIGHT_TILE_BYTES = 8 << 20       # per-buffer cap for a streamed weight tile
_SILU_LANES = 512                  # lane-dense width for the elementwise path


def _round_up(x, m):
    return ((x + m - 1) // m) * m


def _largest_divisor_leq(n, cap):
    cap = max(1, min(cap, n))
    for d in range(cap, 0, -1):
        if n % d == 0:
            return d
    return 1


# ----------------------------------------------------------------------------
# Kernels
# ----------------------------------------------------------------------------
def _swiglu_gated_kernel(x_ref, w_ref, b_ref, o_ref):
    # x_ref: (TM, Dp) resident over the N axis; w_ref: (Dp, TN); b_ref: (1, TN)
    j = pl.program_id(1)
    tn = o_ref.shape[1]

    # Linear: x @ W_tile + b_tile on the MXU, f32 accumulation.
    lin = jnp.dot(x_ref[...], w_ref[...], preferred_element_type=jnp.float32)
    lin = lin + b_ref[...]                                   # (1, TN) broadcast

    # Gate: silu(x[:, j*TN : (j+1)*TN]) in f32 (v5e has no bf16 VPU/EUP path).
    start = pl.multiple_of(j * tn, 128)
    xg = x_ref[:, pl.ds(start, tn)].astype(jnp.float32)
    o_ref[...] = (xg * jax.nn.sigmoid(xg) * lin).astype(o_ref.dtype)


def _silu_kernel(x_ref, o_ref):
    x = x_ref[...].astype(jnp.float32)
    o_ref[...] = (x * jax.nn.sigmoid(x)).astype(o_ref.dtype)


# ----------------------------------------------------------------------------
# Tile-size selection
# ----------------------------------------------------------------------------
def _choose_tiles_gated(m, dpad, itemsize):
    """(TM rows, TN output columns) for the gated path."""
    nblk = dpad // 128
    tn_cap_blocks = max(1, _WEIGHT_TILE_BYTES // (dpad * itemsize * 128))
    tn = _largest_divisor_leq(nblk, tn_cap_blocks) * 128     # TN divides Dp

    # VMEM ~ 2*(TM*Dp + TM*TN)*isz  +  2*Dp*TN*isz  +  2*TN*4  (double-buffered)
    avail = _VMEM_BUDGET_BYTES - 2 * dpad * tn * itemsize - 2 * tn * 4
    tm = avail // (2 * (dpad + tn) * itemsize) if avail > 0 else 8
    tm = max(8, min(int(tm), 1024))
    tm = (tm // 8) * 8
    tm = min(tm, _round_up(m, 8))        # don't over-pad tiny inputs
    return max(tm, 8), tn


def _choose_tm_elementwise(rows, itemsize):
    tm = _VMEM_BUDGET_BYTES // (4 * _SILU_LANES * itemsize)
    tm = max(8, min(int(tm), 2048))
    tm = (tm // 8) * 8
    tm = min(tm, _round_up(rows, 8))
    return max(tm, 8)


# ----------------------------------------------------------------------------
# Wrapper
# ----------------------------------------------------------------------------
def swiglu(x, weight_t=None, bias=None, *, gated=True):
    """x: (B, S, D); weight_t: (D, D) = W.T (in, out); bias: (D,)."""
    B, S, D = x.shape
    M = B * S
    dtype = x.dtype
    itemsize = jnp.dtype(dtype).itemsize

    if gated:
        Dp = _round_up(D, 128)            # lane-dense feature dim
        x2 = x.reshape(M, D)
        if Dp != D:
            x2 = jnp.pad(x2, ((0, 0), (0, Dp - D)))
            w = jnp.pad(weight_t, ((0, Dp - D), (0, Dp - D)))
            b = jnp.pad(bias, (0, Dp - D))
        else:
            w, b = weight_t, bias

        TM, TN = _choose_tiles_gated(M, Dp, itemsize)
        Mp = _round_up(M, TM)
        if Mp != M:
            x2 = jnp.pad(x2, ((0, Mp - M), (0, 0)))

        out2 = pl.pallas_call(
            _swiglu_gated_kernel,
            out_shape=jax.ShapeDtypeStruct((Mp, Dp), dtype),
            grid_spec=pltpu.PrefetchScalarGridSpec(
                num_scalar_prefetch=0,
                grid=(Mp // TM, Dp // TN),
                in_specs=[
                    pl.BlockSpec((TM, Dp), lambda i, j: (i, 0)),  # x rows (resident over j)
                    pl.BlockSpec((Dp, TN), lambda i, j: (0, j)),  # weight column tile
                    pl.BlockSpec((1, TN), lambda i, j: (0, j)),   # bias tile (f32)
                ],
                out_specs=pl.BlockSpec((TM, TN), lambda i, j: (i, j)),
            ),
            compiler_params=pltpu.CompilerParams(
                dimension_semantics=("parallel", "arbitrary"),
                vmem_limit_bytes=_VMEM_LIMIT_BYTES,
            ),
        )(x2, w.astype(dtype), b.reshape(1, Dp).astype(jnp.float32))
        return out2[:M, :D].reshape(B, S, D)

    # --- non-gated: pure SiLU, lane-dense flattened layout ---------------
    N = M * D
    rows = pl.cdiv(N, _SILU_LANES)
    tm = _choose_tm_elementwise(rows, itemsize)
    rows_p = _round_up(rows, tm)
    Np = rows_p * _SILU_LANES

    xf = x.reshape(N)
    if Np != N:
        xf = jnp.pad(xf, (0, Np - N))
    x2 = xf.reshape(rows_p, _SILU_LANES)

    out2 = pl.pallas_call(
        _silu_kernel,
        out_shape=jax.ShapeDtypeStruct((rows_p, _SILU_LANES), dtype),
        grid_spec=pltpu.PrefetchScalarGridSpec(
            num_scalar_prefetch=0,
            grid=(rows_p // tm,),
            in_specs=[pl.BlockSpec((tm, _SILU_LANES), lambda i: (i, 0))],
            out_specs=pl.BlockSpec((tm, _SILU_LANES), lambda i: (i, 0)),
        ),
        compiler_params=pltpu.CompilerParams(
            dimension_semantics=("parallel",),
            vmem_limit_bytes=_VMEM_LIMIT_BYTES,
        ),
    )(x2)
    return out2.reshape(Np)[:N].reshape(B, S, D)


# ----------------------------------------------------------------------------
# Self-test
# ----------------------------------------------------------------------------
if __name__ == "__main__":
    # Small shapes consistent with the module: batch=2, seq=8, embedding_dimension=32
    B, S, D = 2, 8, 32
    key = jax.random.PRNGKey(0)
    x = jax.random.normal(key, (B, S, D), dtype=jnp.float32)

    # Deterministic parameter init matching nn.init.ones_ / nn.init.zeros_
    weight = jnp.ones((D, D), dtype=jnp.float32)    # nn.Linear.weight (out, in)
    bias = jnp.zeros((D,), dtype=jnp.float32)       # nn.Linear.bias
    weight_t = weight.T                              # (in, out) for x @ W.T

    # Gated path
    out = swiglu(x, weight_t, bias, gated=True)
    out = jax.block_until_ready(out)

    silu_ref = x * jax.nn.sigmoid(x)
    lin_ref = jnp.einsum("bsd,od->bso", x, weight) + bias
    ref = silu_ref * lin_ref
    assert jnp.allclose(out, ref, atol=1e-4, rtol=1e-4), "gated mismatch vs reference"

    # Non-gated path
    out_ng = swiglu(x, gated=False)
    out_ng = jax.block_until_ready(out_ng)
    assert jnp.allclose(out_ng, silu_ref, atol=1e-5, rtol=1e-5), "silu mismatch vs reference"

    print("KERNEL_OK")
</pallas_src>

<mosaic_0001>
module attributes {stable_mosaic.version = 11 : i64} {
  func.func @_swiglu_gated_kernel(%arg0: i32, %arg1: i32, %arg2: memref<16x128xf32, #tpu.memory_space<vmem>>, %arg3: memref<128x128xf32, #tpu.memory_space<vmem>>, %arg4: memref<1x128xf32, #tpu.memory_space<vmem>>, %arg5: memref<16x128xf32, #tpu.memory_space<vmem>>) attributes {dimension_semantics = [#tpu.dimension_semantics<parallel>, #tpu.dimension_semantics<arbitrary>], iteration_bounds = array<i64: 1, 1>, scalar_prefetch = 0 : i64, scratch_operands = 0 : i64, tpu.core_type = #tpu.core_type<tc>, window_params = [{transform_indices = @transform_0, window_bounds = array<i64: 16, 128>}, {transform_indices = @transform_1, window_bounds = array<i64: 128, 128>}, {transform_indices = @transform_2, window_bounds = array<i64: 1, 128>}, {transform_indices = @transform_3, window_bounds = array<i64: 16, 128>}]} {
    %c0 = arith.constant 0 : index
    %c0_0 = arith.constant 0 : index
    %0 = vector.load %arg2[%c0, %c0_0] : memref<16x128xf32, #tpu.memory_space<vmem>>, vector<16x128xf32>
    %c0_1 = arith.constant 0 : index
    %c0_2 = arith.constant 0 : index
    %1 = vector.load %arg3[%c0_1, %c0_2] : memref<128x128xf32, #tpu.memory_space<vmem>>, vector<128x128xf32>
    %cst = arith.constant dense<0.000000e+00> : vector<16x128xf32>
    %2 = tpu.matmul %0, %1, %cst {dimension_numbers = #tpu.dot_dimension_numbers<[1], [0], [0], [1], [0, 0, 1, 1], [], []>} : vector<16x128xf32>, vector<128x128xf32>, vector<16x128xf32> -> vector<16x128xf32>
    %c0_3 = arith.constant 0 : index
    %c0_4 = arith.constant 0 : index
    %3 = vector.load %arg4[%c0_3, %c0_4] : memref<1x128xf32, #tpu.memory_space<vmem>>, vector<1x128xf32>
    %4 = vector.broadcast %3 : vector<1x128xf32> to vector<16x128xf32>
    %5 = arith.addf %2, %4 : vector<16x128xf32>
    %c128_i32 = arith.constant 128 : i32
    %6 = arith.muli %arg1, %c128_i32 : i32
    %7 = tpu.assume_multiple %6, 128 : i32
    %c0_5 = arith.constant 0 : index
    %8 = arith.index_cast %7 : i32 to index
    %9 = vector.load %arg2[%c0_5, %8] : memref<16x128xf32, #tpu.memory_space<vmem>>, vector<16x128xf32>
    %10 = arith.negf %9 : vector<16x128xf32>
    %11 = math.exp %10 : vector<16x128xf32>
    %cst_6 = arith.constant 1.000000e+00 : f32
    %12 = vector.broadcast %cst_6 : f32 to vector<16x128xf32>
    %13 = arith.addf %12, %11 : vector<16x128xf32>
    %14 = arith.divf %12, %13 : vector<16x128xf32>
    %15 = arith.mulf %9, %14 : vector<16x128xf32>
    %16 = arith.mulf %15, %5 : vector<16x128xf32>
    %c0_7 = arith.constant 0 : index
    %c0_8 = arith.constant 0 : index
    %17 = vector.load %arg5[%c0_7, %c0_8] : memref<16x128xf32, #tpu.memory_space<vmem>>, vector<16x128xf32>
    tpu.vector_store %arg5[%c0_7, %c0_8], %16 {strides = array<i32>} : memref<16x128xf32, #tpu.memory_space<vmem>>, vector<16x128xf32>,
    return
  }
  func.func @transform_0(%arg0: i32, %arg1: i32) -> (i32, i32) {
    %c0_i32 = arith.constant 0 : i32
    %c0_i32_0 = arith.constant 0 : i32
    return %arg0, %c0_i32 : i32, i32
  }
  func.func @transform_1(%arg0: i32, %arg1: i32) -> (i32, i32) {
    %c0_i32 = arith.constant 0 : i32
    %c0_i32_0 = arith.constant 0 : i32
    return %c0_i32, %arg1 : i32, i32
  }
  func.func @transform_2(%arg0: i32, %arg1: i32) -> (i32, i32) {
    %c0_i32 = arith.constant 0 : i32
    %c0_i32_0 = arith.constant 0 : i32
    return %c0_i32, %arg1 : i32, i32
  }
  func.func @transform_3(%arg0: i32, %arg1: i32) -> (i32, i32) {
    %c0_i32 = arith.constant 0 : i32
    return %arg0, %arg1 : i32, i32
  }
}

</mosaic_0001>

<bundles_post_ra>
// kernel: tpu_custom_call.1
= control target key start
LH: loop header
LB: loop body
LE: loop exit
PB: predicated region body
PF: predicated region fallthrough
CT: control target
= control target key end

     0   :  { %8 = vsyncpa [#allocation3], 0  ;;  %s319_s0 = inlined_call_operand.hbm [shape: f32[16,128], index: 0, kind: input, shape index: {}]   ;;  %s320_s1 = inlined_call_operand.hbm [shape: f32[128,128], index: 1, kind: input, shape index: {}]   ;;  %s321_s2 = inlined_call_operand.vmem [shape: f32[1,128], index: 2, kind: input, shape index: {}]   ;;  %s322_s3 = inlined_call_operand.hbm [shape: f32[16,128], index: 3, kind: output, shape index: {}]  }
   0x1   :  { %9 = vsyncpa [#allocation6], 0 }
   0x2   :  { %10 = vsyncpa [#allocation4], 0  ;;  %s15_s14 = sshll.u32 %s319_s0, 4  ;;  %s273_s15 = smov [#allocation2]   ;;  %s16_s14 = int_to_ptr.hbm [resolvable:$true] %s15_s14 }
   0x3   :  { %s17_s16 = sshll.u32 %s273_s15, 4  ;;  %s28_s19 = sshll.u32 %s320_s1, 4  ;;  %s18_s16 = int_to_ptr.vmem [resolvable:$true] %s17_s16  ;;  %s29_s19 = int_to_ptr.hbm [resolvable:$true] %s28_s19 }
   0x4   :  { %s274_s20 = smov 128   ;;  %s275_s21 = smov 8  }
   0x5   :  { %23 = dma.hbm_to_vmem [thread:$0]  %s16_s14, 256, %s18_s16, [#allocation3], %s274_s20, %s274_s20, %s275_s21  }
   0x6   :  { %s276_s22 = smov [#allocation5]  }
   0x7   :  { %s30_s23 = sshll.u32 %s276_s22, 4  ;;  %s31_s23 = int_to_ptr.vmem [resolvable:$true] %s30_s23 }
   0x8   :  { %36 = dma.hbm_to_vmem [thread:$0]  %s29_s19, 2048, %s31_s23, [#allocation6], %s274_s20, %s274_s20, %s275_s21  }
   0x9   :  { %267 = dma.done.wait [#allocation3], 256  }
   0xa   :  { %268 = vsyncadd [#allocation3], 4294967040 }
   0xb   :  { %269 = dma.done.wait [#allocation6], 2048  }
   0xc   :  { %270 = vsyncadd [#allocation6], 4294965248  ;;  %v64_v0 = vld [vmem:[#allocation5 + $0x78] sm:$0xff]  ;;  %v63_v1 = vld [vmem:[#allocation5 + $0x70] sm:$0xff]  ;;  %s277_s24 = smov [#allocation7]   ;;  %s148_s28 = sshll.u32 %s322_s3, 4  ;;  %s149_s28 = int_to_ptr.hbm [resolvable:$true] %s148_s28 }
   0xd   :  { %69 = vmatpush.msra.mxu0 %v64_v0  ;;  %165 = vmatpush.msra.mxu1 %v64_v0  ;;  %v62_v2 = vld [vmem:[#allocation5 + $0x68] sm:$0xff]  ;;  %v61_v3 = vld [vmem:[#allocation5 + $0x60] sm:$0xff]  ;;  %v60_v4 = vld [vmem:[#allocation5 + $0x58] sm:$0xff]  ;;  %s146_s25 = sshll.u32 %s277_s24, 4  ;;  %s147_s25 = int_to_ptr.vmem [resolvable:$true] %s146_s25 }
   0xe   :  { %v59_v5 = vld [vmem:[#allocation5 + $0x50] sm:$0xff]  ;;  %v58_v6 = vld [vmem:[#allocation5 + $0x48] sm:$0xff]  ;;  %v57_v7 = vld [vmem:[#allocation5 + $0x40] sm:$0xff] }
   0xf   :  { %70 = vmatpush.msra.mxu0 %v63_v1  ;;  %166 = vmatpush.msra.mxu1 %v63_v1  ;;  %v56_v8 = vld [vmem:[#allocation5 + $0x38] sm:$0xff]  ;;  %v55_v9 = vld [vmem:[#allocation5 + $0x30] sm:$0xff]  ;;  %v54_v10 = vld [vmem:[#allocation5 + $0x28] sm:$0xff] }
  0x10   :  { %v53_v11 = vld [vmem:[#allocation5 + $0x20] sm:$0xff]  ;;  %v52_v12 = vld [vmem:[#allocation5 + $0x18] sm:$0xff]  ;;  %v51_v13 = vld [vmem:[#allocation5 + $0x10] sm:$0xff] }
  0x11   :  { %71 = vmatpush.msra.mxu0 %v62_v2  ;;  %167 = vmatpush.msra.mxu1 %v62_v2  ;;  %v50_v14 = vld [vmem:[#allocation5 + $0x8] sm:$0xff]  ;;  %v49_v15 = vld [vmem:[#allocation5] sm:$0xff]  ;;  %v47_v16 = vld [vmem:[#allocation2] sm:$0xff] }
  0x12   :  { %v48_v17 = vld [vmem:[#allocation2 + $0x8] sm:$0xff]  ;;  %v163_v18 = vmul.f32 -1.442695, %v47_v16  ;;  %v186_v44 = vld [vmem:[%s321_s2] ss:$0 sm:$0xff] }
  0x13   :  { %72 = vmatpush.msra.mxu0 %v61_v3  ;;  %168 = vmatpush.msra.mxu1 %v61_v3  ;;  %v164_v19 = vmul.f32 -1.442695, %v48_v17 }
  0x14   :  { %187 = vpow2.f32 %v163_v18 }
  0x15   :  { %73 = vmatpush.msra.mxu0 %v60_v4  ;;  %169 = vmatpush.msra.mxu1 %v60_v4  ;;  %189 = vpow2.f32 %v164_v19 }
  0x17   :  { %74 = vmatpush.msra.mxu0 %v59_v5  ;;  %170 = vmatpush.msra.mxu1 %v59_v5 }
  0x19   :  { %75 = vmatpush.msra.mxu0 %v58_v6  ;;  %171 = vmatpush.msra.mxu1 %v58_v6 }
  0x1a   :  { %v188_v20 = vpop.eup %187 }
  0x1b   :  { %76 = vmatpush.msra.mxu0 %v57_v7  ;;  %172 = vmatpush.msra.mxu1 %v57_v7  ;;  %v190_v21 = vpop.eup %189  ;;  %v104_v22 = vadd.f32 1.0, %v188_v20 }
  0x1c   :  { %v105_v23 = vadd.f32 1.0, %v190_v21 }
  0x1d   :  { %77 = vmatpush.msra.mxu0 %v56_v8  ;;  %173 = vmatpush.msra.mxu1 %v56_v8  ;;  %191 = vrcp.f32 %v104_v22  ;;  %vm111_vm0 = vweird.f32 %v104_v22  ;;  %v117_v32 = vand.u32 2147483648, %v104_v22  ;;  %v115_v35 = vand.u32 2147483647, %v104_v22 }
  0x1e   :  { %193 = vrcp.f32 %v105_v23  ;;  %vm126_vm2 = vweird.f32 %v105_v23  ;;  %v132_v33 = vand.u32 2147483648, %v105_v23  ;;  %v130_v37 = vand.u32 2147483647, %v105_v23 }
  0x1f   :  { %78 = vmatpush.msra.mxu0 %v55_v9  ;;  %174 = vmatpush.msra.mxu1 %v55_v9  ;;  %v118_v38 = vor.u32 1.1754944e-38, %v117_v32  ;;  %vm116_vm6 = vcmp.eq.f32.partialorder %v115_v35, 8.507059e+37 }
  0x20   :  { %v133_v39 = vor.u32 1.1754944e-38, %v132_v33  ;;  %vm131_vm7 = vcmp.eq.f32.partialorder %v130_v37, 8.507059e+37 }
  0x21   :  { %79 = vmatpush.msra.mxu0 %v54_v10  ;;  %175 = vmatpush.msra.mxu1 %v54_v10 }
  0x23   :  { %80 = vmatpush.msra.mxu0 %v53_v11  ;;  %176 = vmatpush.msra.mxu1 %v53_v11  ;;  %v192_v24 = vpop.eup %191 }
  0x24   :  { %v194_v25 = vpop.eup %193  ;;  %v107_v26 = vmul.f32 %v192_v24, %v104_v22  ;;  %vm112_vm1 = vweird.f32 %v192_v24 }
  0x25   :  { %81 = vmatpush.msra.mxu0 %v52_v12  ;;  %177 = vmatpush.msra.mxu1 %v52_v12  ;;  %v122_v27 = vmul.f32 %v194_v25, %v105_v23  ;;  %vm127_vm3 = vweird.f32 %v194_v25  ;;  %vm113_vm4 = vmor %vm111_vm0, %vm112_vm1 }
  0x26   :  { %v108_v28 = vsub.f32 1.0, %v107_v26  ;;  %vm128_vm5 = vmor %vm126_vm2, %vm127_vm3 }
  0x27   :  { %82 = vmatpush.msra.mxu0 %v51_v13  ;;  %178 = vmatpush.msra.mxu1 %v51_v13  ;;  %v123_v29 = vsub.f32 1.0, %v122_v27 }
  0x28   :  { %v109_v30 = vmul.f32 %v192_v24, %v108_v28 }
  0x29   :  { %83 = vmatpush.msra.mxu0 %v50_v14  ;;  %179 = vmatpush.msra.mxu1 %v50_v14  ;;  %v124_v31 = vmul.f32 %v194_v25, %v123_v29 }
  0x2a   :  { %v110_v34 = vadd.f32 %v192_v24, %v109_v30 }
  0x2b   :  { %84 = vmatpush.msra.mxu0 %v49_v15  ;;  %180 = vmatpush.msra.mxu1 %v49_v15  ;;  %v125_v36 = vadd.f32 %v194_v25, %v124_v31 }
  0x2c   :  { %85 = vmatmul.f32.vlgmr.msra.gmra.mxu0 %v47_v16  ;;  %88 = vmatmul.f32.vlgmr.msra.gmra.mxu1 %v48_v17  ;;  %v114_v40 = vsel %vm113_vm4, %v192_v24, %v110_v34 }
  0x2d   :  { %v129_v41 = vsel %vm128_vm5, %v194_v25, %v125_v36  ;;  %v119_v42 = vsel %vm116_vm6, %v118_v38, %v114_v40 }
  0x2e   :  { %v134_v43 = vsel %vm131_vm7, %v133_v39, %v129_v41  ;;  %v136_v45 = vmul.f32 %v119_v42, %v47_v16 }
  0x2f   :  { %v137_v46 = vmul.f32 %v134_v43, %v48_v17 }
  0xa9   :  { %v86_v47 = vpop.f32.mrf.mxu0  ;;  %v89_v48 = vpop.f32.mrf.mxu1 }
  0xaa   :  { %v87_v49 = vadd.f32 %v186_v44, %v86_v47  ;;  %v90_v50 = vadd.f32 %v186_v44, %v89_v48 }
  0xac   :  { %v138_v51 = vmul.f32 %v136_v45, %v87_v49  ;;  %v139_v52 = vmul.f32 %v137_v46, %v90_v50 }
  0xae   :  { %140 = vst [vmem:[#allocation7] sm:$0xff] %v138_v51 }
  0xaf   :  { %141 = vst [vmem:[#allocation7 + $0x8] sm:$0xff] %v139_v52 }
  0xb0   :  { %154 = dma.vmem_to_hbm [thread:$0]  %s147_s25, 256, %s149_s28, [#allocation4], %s274_s20, %s274_s20, %s275_s21  }
  0xb1   :  { %271 = dma.done.wait [#allocation4], 256  }
  0xb2   :  { %272 = vsyncadd [#allocation4], 4294967040 }
  0xb3   :  { %159 = vsyncpa [#allocation3], 1 }
  0xb4   :  { %160 = vsyncpa [#allocation6], 1 }
  0xb5   :  { %161 = vsyncpa [#allocation4], 1 }

</bundles_post_ra>
